<compile_context>
chip_gen: v7x
topology: tpu7x:2x2x1
jax: 0.10.0
libtpu: 0.0.40
codegen_flags: <defaults>
</compile_context>

<pallas_src>
import jax
import jax.numpy as jnp
from jax.experimental import pallas as pl
from jax.experimental.pallas import tpu as pltpu


def _sigmoid_kernel(x_ref, o_ref):
    # Elementwise sigmoid on the VMEM tile. Compute in f32 for accuracy and
    # cast back to the output dtype (matches torch.Tensor.sigmoid for f32).
    # TODO(synk): on v6e/v7x a bf16 input could skip the f32 upcast (bf16 EUP),
    # but v5e has no bf16 VPU/EUP, so keep the portable f32 path here.
    x = x_ref[...].astype(jnp.float32)
    denom = 1.0 + jnp.exp(-x)  # exp goes to the EUP slot
    # approx=False keeps exact numerics (approx=True would trade ~2^-12 rel
    # error for an EUP reciprocal; irrelevant for a memory-bound kernel).
    o_ref[...] = pl.reciprocal(denom, approx=False).astype(o_ref.dtype)


def _sublane_multiple(dtype) -> int:
    # 8 rows for 32-bit, 16 for 16-bit, 32 for 8-bit packed dtypes.
    bits = jnp.dtype(dtype).itemsize * 8
    return max(8, 256 // bits)


def sigmoid(x: jnp.ndarray) -> jnp.ndarray:
    """Apply sigmoid elementwise via a Pallas TPU kernel.

    Works for any input shape/dtype; returns an array of identical shape/dtype.
    """
    orig_shape = x.shape
    dtype = x.dtype
    n = int(x.size)
    if n == 0:
        return x

    LANE = 128
    itemsize = jnp.dtype(dtype).itemsize
    sub = _sublane_multiple(dtype)

    # Only pad when the flat size is ragged w.r.t. the 128-lane axis.
    n_pad = pl.cdiv(n, LANE) * LANE
    flat = x.reshape(-1)
    needs_pad = n_pad != n
    if needs_pad:
        flat = jnp.pad(flat, (0, n_pad - n))

    # Pick a wide, lane-dense column count that evenly divides the flat size,
    # preferring a factorization whose row count fills the sublanes.
    candidates = (4096, 2048, 1024, 512, 256, 128)
    cols = LANE
    for c in candidates:
        if n_pad % c == 0 and (n_pad // c) >= sub:
            cols = c
            break
    else:
        for c in candidates:
            if n_pad % c == 0:
                cols = c
                break
    rows = n_pad // cols

    # ~2 MiB per block, rounded down to the dtype sublane multiple. A block
    # that covers the full row extent (tm == rows) is always legal.
    target_block_bytes = 2 * 1024 * 1024
    tm = target_block_bytes // (cols * itemsize)
    tm = max(sub, (tm // sub) * sub)
    tm = min(tm, rows)

    grid = (pl.cdiv(rows, tm),)

    cost = pl.CostEstimate(
        flops=3 * n_pad,
        transcendentals=n_pad,
        bytes_accessed=2 * n_pad * itemsize,
    )

    out2d = pl.pallas_call(
        _sigmoid_kernel,
        out_shape=jax.ShapeDtypeStruct((rows, cols), dtype),
        grid_spec=pltpu.PrefetchScalarGridSpec(
            num_scalar_prefetch=0,
            grid=grid,
            in_specs=[pl.BlockSpec((tm, cols), lambda i: (i, 0))],
            out_specs=pl.BlockSpec((tm, cols), lambda i: (i, 0)),
        ),
        compiler_params=pltpu.CompilerParams(
            dimension_semantics=("parallel",),
        ),
        cost_estimate=cost,
    )(flat.reshape(rows, cols))

    out_flat = out2d.reshape(-1)
    if needs_pad:
        out_flat = out_flat[:n]
    return out_flat.reshape(orig_shape)


if __name__ == "__main__":
    key = jax.random.PRNGKey(0)

    # Small NCHW-style input, consistent with typical conv-net activations.
    x = jax.random.normal(key, (2, 4, 16, 16), dtype=jnp.float32)
    y = jax.block_until_ready(sigmoid(x))
    y_ref = jax.nn.sigmoid(x)
    assert y.shape == x.shape and y.dtype == x.dtype
    assert jnp.allclose(y, y_ref, atol=1e-6, rtol=1e-6)

    # Also exercise the ragged (non-multiple-of-128) fallback path.
    x2 = jax.random.normal(jax.random.PRNGKey(1), (3, 5, 7), dtype=jnp.float32)
    y2 = jax.block_until_ready(sigmoid(x2))
    assert y2.shape == x2.shape and y2.dtype == x2.dtype
    assert jnp.allclose(y2, jax.nn.sigmoid(x2), atol=1e-6, rtol=1e-6)

    print("KERNEL_OK")
</pallas_src>

<mosaic_0001>
module attributes {stable_mosaic.version = 11 : i64} {
  func.func @_sigmoid_kernel(%arg0: i32, %arg1: memref<8x256xf32, #tpu.memory_space<vmem>>, %arg2: memref<8x256xf32, #tpu.memory_space<vmem>>) attributes {dimension_semantics = [#tpu.dimension_semantics<parallel>], iteration_bounds = array<i64: 1>, scalar_prefetch = 0 : i64, scratch_operands = 0 : i64, tpu.core_type = #tpu.core_type<tc>, window_params = [{transform_indices = @transform_0, window_bounds = array<i64: 8, 256>}, {transform_indices = @transform_1, window_bounds = array<i64: 8, 256>}]} {
    %c0 = arith.constant 0 : index
    %c0_0 = arith.constant 0 : index
    %0 = vector.load %arg1[%c0, %c0_0] : memref<8x256xf32, #tpu.memory_space<vmem>>, vector<8x256xf32>
    %cst = arith.constant 0.000000e+00 : f32
    %1 = vector.broadcast %cst : f32 to vector<8x256xf32>
    %2 = arith.subf %1, %0 : vector<8x256xf32>
    %3 = math.exp %2 : vector<8x256xf32>
    %cst_1 = arith.constant 1.000000e+00 : f32
    %4 = vector.broadcast %cst_1 : f32 to vector<8x256xf32>
    %5 = arith.addf %4, %3 : vector<8x256xf32>
    %6 = tpu.reciprocal %5 : vector<8x256xf32> -> vector<8x256xf32>
    %c0_2 = arith.constant 0 : index
    %c0_3 = arith.constant 0 : index
    %7 = vector.load %arg2[%c0_2, %c0_3] : memref<8x256xf32, #tpu.memory_space<vmem>>, vector<8x256xf32>
    tpu.vector_store %arg2[%c0_2, %c0_3], %6 {strides = array<i32>} : memref<8x256xf32, #tpu.memory_space<vmem>>, vector<8x256xf32>,
    return
  }
  func.func @transform_0(%arg0: i32) -> (i32, i32) {
    %c0_i32 = arith.constant 0 : i32
    %c0_i32_0 = arith.constant 0 : i32
    return %arg0, %c0_i32 : i32, i32
  }
  func.func @transform_1(%arg0: i32) -> (i32, i32) {
    %c0_i32 = arith.constant 0 : i32
    %c0_i32_0 = arith.constant 0 : i32
    return %arg0, %c0_i32 : i32, i32
  }
}

</mosaic_0001>

<bundles_post_ra>
// kernel: tpu_custom_call.1
= control target key start
LH: loop header
LB: loop body
LE: loop exit
PB: predicated region body
PF: predicated region fallthrough
CT: control target
= control target key end

     0   :  { %6 = vsyncpa [#allocation3], 0  ;;  %s144_s0 = inlined_call_operand.hbm [shape: f32[8,256], index: 0, kind: input, shape index: {}]   ;;  %s145_s1 = inlined_call_operand.hbm [shape: f32[8,256], index: 1, kind: output, shape index: {}]  }
   0x1   :  { %7 = vsyncpa [#allocation4], 0  ;;  %s108_s6 = smov [#allocation2]   ;;  %s60_s10 = scalar_lea.hbm %s144_s0, 256 }
   0x2   :  { %s14_s7 = sshll.u32 %s108_s6, 4  ;;  %p61_p0 = scmp.ne.s32.totalorder %s144_s0, %s60_s10  ;;  %s15_s7 = int_to_ptr.vmem [resolvable:$true] %s14_s7 }
   0x3   :  { %p64_p1 = scmp.lt.u32.totalorder %s60_s10, %s144_s0 }
   0x5   :  { %p66_p2 = pnand %p64_p1, %p61_p0 }
   0x7   :  { %69 = shalt.err (!%p66_p2)
}
   0x8   :  { %s70_s15 = scalar_lea.vmem %s15_s7, 256  ;;  %p75_p4 = scmp.lt.s32.totalorder %s15_s7, %s15_s7 }
   0x9   :  { %p71_p3 = scmp.ne.s32.totalorder %s15_s7, %s70_s15  ;;  %p76_p5 = scmp.lt.s32.totalorder %s70_s15, %s70_s15 }
   0xb   :  { %p77_p6 = por %p76_p5, %p75_p4 }
   0xd   :  { %p78_p7 = pnand %p77_p6, %p71_p3 }
   0xf   :  { %81 = shalt.err (!%p78_p7)
}
  0x10   :  { %17 = dma.hbm_to_vmem [thread:$0]  %s144_s0, 256, %s15_s7, [#allocation3]  }
  0x11   :  { %104 = dma.done.wait [#allocation3], 256  }
  0x12   :  { %105 = vsyncadd [#allocation3], 4294967040  ;;  %v21_v0 = vld [vmem:[#allocation2] sm:$0xff]  ;;  %v22_v1 = vld [vmem:[#allocation2 + $0x8] sm:$0xff]  ;;  %s109_s18 = smov [#allocation5]  }
  0x13   :  { %v23_v2 = vsub.f32 0.0, %v21_v0  ;;  %v24_v3 = vsub.f32 0.0, %v22_v1  ;;  %s41_s19 = sshll.u32 %s109_s18, 4  ;;  %s42_s19 = int_to_ptr.vmem [resolvable:$true] %s41_s19 }
  0x14   :  { %s82_s0 = scalar_lea.vmem %s42_s19, 256  ;;  %p87_p9 = scmp.lt.s32.totalorder %s42_s19, %s42_s19 }
  0x15   :  { %v25_v4 = vmul.f32 1.442695, %v23_v2  ;;  %v27_v5 = vmul.f32 1.442695, %v24_v3  ;;  %p83_p8 = scmp.ne.s32.totalorder %s42_s19, %s82_s0  ;;  %p88_p10 = scmp.lt.s32.totalorder %s82_s0, %s82_s0 }
  0x17   :  { %52 = vpow2.f32 %v25_v4  ;;  %p89_p11 = por %p88_p10, %p87_p9 }
  0x18   :  { %54 = vpow2.f32 %v27_v5 }
  0x19   :  { %p90_p12 = pnand %p89_p11, %p83_p8 }
  0x21   :  { %v53_v6 = vpop.eup %52 }
  0x22   :  { %v55_v7 = vpop.eup %54  ;;  %v29_v8 = vadd.f32 1.0, %v53_v6 }
  0x23   :  { %v30_v9 = vadd.f32 1.0, %v55_v7 }
  0x24   :  { %56 = vrcp.f32 %v29_v8 }
  0x25   :  { %58 = vrcp.f32 %v30_v9 }
  0x2e   :  { %v57_v10 = vpop.eup %56 }
  0x2f   :  { %v59_v11 = vpop.eup %58  ;;  %33 = vst [vmem:[#allocation5] sm:$0xff] %v57_v10 }
  0x30   :  { %34 = vst [vmem:[#allocation5 + $0x8] sm:$0xff] %v59_v11 }
  0x31   :  { %93 = shalt.err (!%p90_p12)
}
  0x32   :  { %s94_s22 = scalar_lea.hbm %s145_s1, 256 }
  0x33   :  { %p95_p13 = scmp.ne.s32.totalorder %s145_s1, %s94_s22  ;;  %p98_p0 = scmp.lt.u32.totalorder %s94_s22, %s145_s1 }
  0x35   :  { %p100_p1 = pnand %p98_p0, %p95_p13 }
  0x37   :  { %103 = shalt.err (!%p100_p1)
}
  0x38   :  { %44 = dma.vmem_to_hbm [thread:$0]  %s42_s19, 256, %s145_s1, [#allocation4]  }
  0x39   :  { %106 = dma.done.wait [#allocation4], 256  }
  0x3a   :  { %107 = vsyncadd [#allocation4], 4294967040 }
  0x3b   :  { %48 = vsyncpa [#allocation3], 1 }
  0x3c   :  { %49 = vsyncpa [#allocation4], 1 }

</bundles_post_ra>
